<compile_context>
chip_gen: v7x
topology: tpu7x:2x2x1
jax: 0.10.0
libtpu: 0.0.40
codegen_flags: <defaults>
</compile_context>

<pallas_src>
import jax
import jax.numpy as jnp
from jax.experimental import pallas as pl
from jax.experimental.pallas import tpu as pltpu

_HIDDEN = 64
_TILE_B_MAX = 2048       # batch rows (lanes) per grid step
_MIN_PALLAS_BATCH = 128  # below this, plain XLA beats the kernel launch cost


def _critic_kernel(xT_ref, w1_ref, b1_ref, w2_ref, b2_ref, w3_ref, b3_ref,
                   o_ref):
    # Feature-major dataflow: batch lives on the 128-lane axis everywhere.
    # fc1: [64, in] @ [in, tb] -> [64, tb]
    h1 = jnp.dot(w1_ref[...], xT_ref[...],
                 preferred_element_type=jnp.float32) + b1_ref[...]
    h1 = jnp.maximum(h1, 0.0)
    # fc2: [64, 64] @ [64, tb] -> [64, tb]
    h2 = jnp.dot(w2_ref[...], h1,
                 preferred_element_type=jnp.float32) + b2_ref[...]
    h2 = jnp.maximum(h2, 0.0)
    # fc3: [1, 64] @ [64, tb] -> [1, tb]  (natively lane-dense output row)
    q = jnp.dot(w3_ref[...], h2,
                preferred_element_type=jnp.float32) + b3_ref[...]
    o_ref[...] = q.astype(o_ref.dtype)


def _choose_tile_b(B):
    if B < 256:
        return B                       # one full block (no (8,128) issue)
    # >= 2 lane-dense 128-multiple blocks so both v7x TensorCores get work;
    # cap block size for per-step-overhead amortization on v5e/v6e.
    half = -(-B // 2)                  # cdiv(B, 2)
    tile = -(-half // 128) * 128       # round up to a multiple of 128
    return min(tile, _TILE_B_MAX)


def _critic_pallas(obs, action, params):
    B, obs_dim = obs.shape
    act_dim = action.shape[1]
    in_dim = obs_dim + act_dim
    H = params["w2"].shape[0]

    # Single fused, feature-major input stream: [in_dim, B], batch on lanes.
    xT = jnp.concatenate([obs, action], axis=1).T

    tile_b = _choose_tile_b(B)
    grid = (pl.cdiv(B, tile_b),)

    resident = lambda a: pl.BlockSpec(a.shape, lambda i: (0, 0))

    flops = 2 * B * (in_dim * H + H * H + H)
    bytes_accessed = 4 * (B * (in_dim + 1) + in_dim * H + H * H + 3 * H + 1)

    qT = pl.pallas_call(
        _critic_kernel,
        out_shape=jax.ShapeDtypeStruct((1, B), jnp.float32),
        grid=grid,
        in_specs=[
            pl.BlockSpec((in_dim, tile_b), lambda i: (0, i)),   # activations
            resident(params["w1"]),
            resident(params["b1"]),
            resident(params["w2"]),
            resident(params["b2"]),
            resident(params["w3"]),
            resident(params["b3"]),
        ],
        out_specs=pl.BlockSpec((1, tile_b), lambda i: (0, i)),  # lane-dense
        compiler_params=pltpu.CompilerParams(
            dimension_semantics=("parallel",)),
        cost_estimate=pl.CostEstimate(
            flops=flops, transcendentals=0, bytes_accessed=bytes_accessed),
    )(xT, params["w1"], params["b1"], params["w2"], params["b2"],
      params["w3"], params["b3"])
    return qT.reshape(B, 1)


def _critic_xla(obs, action, params):
    # Tiny-batch path: fused XLA matmul chain (launch overhead would dominate).
    x = jnp.concatenate([obs, action], axis=1)
    h1 = jnp.maximum(x @ params["w1"].T + params["b1"][:, 0], 0.0)
    h2 = jnp.maximum(h1 @ params["w2"].T + params["b2"][:, 0], 0.0)
    return h2 @ params["w3"].T + params["b3"][:, 0]


@jax.jit
def critic_forward(obs, action, params):
    """obs: [B, obs_dim], action: [B, act_dim] -> q: [B, 1] (float32)."""
    B = obs.shape[0]
    if B < _MIN_PALLAS_BATCH:
        return _critic_xla(obs, action, params)
    return _critic_pallas(obs, action, params)


def init_critic_params(key, total_obs_dim, total_action_dim):
    """PyTorch nn.Linear-style init (uniform +/- 1/sqrt(fan_in)), stored once
    in kernel-ready layout: weights [out, in] (PyTorch layout, used directly
    in the transposed dataflow), biases as [out, 1] columns."""
    in_dim = total_obs_dim + total_action_dim
    layer_dims = [(in_dim, _HIDDEN), (_HIDDEN, _HIDDEN), (_HIDDEN, 1)]
    params = {}
    for idx, (fan_in, fan_out) in enumerate(layer_dims, start=1):
        key, kw, kb = jax.random.split(key, 3)
        bound = 1.0 / jnp.sqrt(jnp.float32(fan_in))
        params[f"w{idx}"] = jax.random.uniform(
            kw, (fan_out, fan_in), jnp.float32, -bound, bound)
        params[f"b{idx}"] = jax.random.uniform(
            kb, (fan_out, 1), jnp.float32, -bound, bound)
    return params


def critic_reference(obs, action, params):
    x = jnp.concatenate([obs, action], axis=1)
    h1 = jnp.maximum(x @ params["w1"].T + params["b1"][:, 0], 0.0)
    h2 = jnp.maximum(h1 @ params["w2"].T + params["b2"][:, 0], 0.0)
    return h2 @ params["w3"].T + params["b3"][:, 0]


if __name__ == "__main__":
    key = jax.random.PRNGKey(0)
    total_obs_dim, total_action_dim = 24, 8

    k_p, k_obs, k_act = jax.random.split(key, 3)
    params = init_critic_params(k_p, total_obs_dim, total_action_dim)

    # 256: kernel path, two 128-lane blocks (exercises megacore split).
    # 1000: kernel path, ragged final block (OOB-masked writeback).
    # 4: tiny-batch XLA fallback path.
    for idx, batch in enumerate((256, 1000, 4)):
        ko = jax.random.fold_in(k_obs, idx)
        ka = jax.random.fold_in(k_act, idx)
        obs = jax.random.normal(ko, (batch, total_obs_dim), jnp.float32)
        act = jax.random.normal(ka, (batch, total_action_dim), jnp.float32)
        out = jax.block_until_ready(critic_forward(obs, act, params))
        ref = critic_reference(obs, act, params)
        assert out.shape == (batch, 1), f"bad shape at B={batch}"
        assert jnp.allclose(out, ref, atol=1e-4, rtol=1e-4), \
            f"mismatch at B={batch}"

    print("KERNEL_OK")
</pallas_src>

<mosaic_0001>
module attributes {stable_mosaic.version = 11 : i64} {
  func.func @_critic_kernel(%arg0: i32, %arg1: memref<32x128xf32, #tpu.memory_space<vmem>>, %arg2: memref<64x32xf32, #tpu.memory_space<vmem>>, %arg3: memref<64x1xf32, #tpu.memory_space<vmem>>, %arg4: memref<64x64xf32, #tpu.memory_space<vmem>>, %arg5: memref<64x1xf32, #tpu.memory_space<vmem>>, %arg6: memref<1x64xf32, #tpu.memory_space<vmem>>, %arg7: memref<1x1xf32, #tpu.memory_space<vmem>>, %arg8: memref<1x128xf32, #tpu.memory_space<vmem>>) attributes {dimension_semantics = [#tpu.dimension_semantics<parallel>], iteration_bounds = array<i64: 2>, scalar_prefetch = 0 : i64, scratch_operands = 0 : i64, tpu.core_type = #tpu.core_type<tc>, window_params = [{transform_indices = @transform_0, window_bounds = array<i64: 32, 128>}, {pipeline_mode = #tpu.pipeline_mode<synchronous>, transform_indices = @transform_1, window_bounds = array<i64: 64, 32>}, {pipeline_mode = #tpu.pipeline_mode<synchronous>, transform_indices = @transform_2, window_bounds = array<i64: 64, 1>}, {pipeline_mode = #tpu.pipeline_mode<synchronous>, transform_indices = @transform_3, window_bounds = array<i64: 64, 64>}, {pipeline_mode = #tpu.pipeline_mode<synchronous>, transform_indices = @transform_4, window_bounds = array<i64: 64, 1>}, {pipeline_mode = #tpu.pipeline_mode<synchronous>, transform_indices = @transform_5, window_bounds = array<i64: 1, 64>}, {pipeline_mode = #tpu.pipeline_mode<synchronous>, transform_indices = @transform_6, window_bounds = array<i64: 1, 1>}, {transform_indices = @transform_7, window_bounds = array<i64: 1, 128>}]} {
    %c0 = arith.constant 0 : index
    %c0_0 = arith.constant 0 : index
    %0 = vector.load %arg2[%c0, %c0_0] : memref<64x32xf32, #tpu.memory_space<vmem>>, vector<64x32xf32>
    %c0_1 = arith.constant 0 : index
    %c0_2 = arith.constant 0 : index
    %1 = vector.load %arg1[%c0_1, %c0_2] : memref<32x128xf32, #tpu.memory_space<vmem>>, vector<32x128xf32>
    %cst = arith.constant dense<0.000000e+00> : vector<64x128xf32>
    %2 = tpu.matmul %0, %1, %cst {dimension_numbers = #tpu.dot_dimension_numbers<[1], [0], [0], [1], [0, 0, 1, 1], [], []>} : vector<64x32xf32>, vector<32x128xf32>, vector<64x128xf32> -> vector<64x128xf32>
    %c0_3 = arith.constant 0 : index
    %c0_4 = arith.constant 0 : index
    %3 = vector.load %arg3[%c0_3, %c0_4] : memref<64x1xf32, #tpu.memory_space<vmem>>, vector<64x1xf32>
    %4 = vector.broadcast %3 : vector<64x1xf32> to vector<64x128xf32>
    %5 = arith.addf %2, %4 : vector<64x128xf32>
    %cst_5 = arith.constant 0.000000e+00 : f32
    %6 = vector.broadcast %cst_5 : f32 to vector<64x128xf32>
    %7 = arith.maximumf %5, %6 : vector<64x128xf32>
    %c0_6 = arith.constant 0 : index
    %c0_7 = arith.constant 0 : index
    %8 = vector.load %arg4[%c0_6, %c0_7] : memref<64x64xf32, #tpu.memory_space<vmem>>, vector<64x64xf32>
    %cst_8 = arith.constant dense<0.000000e+00> : vector<64x128xf32>
    %9 = tpu.matmul %8, %7, %cst_8 {dimension_numbers = #tpu.dot_dimension_numbers<[1], [0], [0], [1], [0, 0, 1, 1], [], []>} : vector<64x64xf32>, vector<64x128xf32>, vector<64x128xf32> -> vector<64x128xf32>
    %c0_9 = arith.constant 0 : index
    %c0_10 = arith.constant 0 : index
    %10 = vector.load %arg5[%c0_9, %c0_10] : memref<64x1xf32, #tpu.memory_space<vmem>>, vector<64x1xf32>
    %11 = vector.broadcast %10 : vector<64x1xf32> to vector<64x128xf32>
    %12 = arith.addf %9, %11 : vector<64x128xf32>
    %cst_11 = arith.constant 0.000000e+00 : f32
    %13 = vector.broadcast %cst_11 : f32 to vector<64x128xf32>
    %14 = arith.maximumf %12, %13 : vector<64x128xf32>
    %c0_12 = arith.constant 0 : index
    %c0_13 = arith.constant 0 : index
    %15 = vector.load %arg6[%c0_12, %c0_13] : memref<1x64xf32, #tpu.memory_space<vmem>>, vector<1x64xf32>
    %cst_14 = arith.constant dense<0.000000e+00> : vector<1x128xf32>
    %16 = tpu.matmul %15, %14, %cst_14 {dimension_numbers = #tpu.dot_dimension_numbers<[1], [0], [0], [1], [0, 0, 1, 1], [], []>} : vector<1x64xf32>, vector<64x128xf32>, vector<1x128xf32> -> vector<1x128xf32>
    %c0_15 = arith.constant 0 : index
    %c0_16 = arith.constant 0 : index
    %17 = vector.load %arg7[%c0_15, %c0_16] : memref<1x1xf32, #tpu.memory_space<vmem>>, vector<1x1xf32>
    %18 = vector.broadcast %17 : vector<1x1xf32> to vector<1x128xf32>
    %19 = arith.addf %16, %18 : vector<1x128xf32>
    %c0_17 = arith.constant 0 : index
    %c0_18 = arith.constant 0 : index
    %20 = vector.load %arg8[%c0_17, %c0_18] : memref<1x128xf32, #tpu.memory_space<vmem>>, vector<1x128xf32>
    tpu.vector_store %arg8[%c0_17, %c0_18], %19 {strides = array<i32>} : memref<1x128xf32, #tpu.memory_space<vmem>>, vector<1x128xf32>,
    return
  }
  func.func @transform_0(%arg0: i32) -> (i32, i32) {
    %c0_i32 = arith.constant 0 : i32
    %c0_i32_0 = arith.constant 0 : i32
    return %c0_i32, %arg0 : i32, i32
  }
  func.func @transform_1(%arg0: i32) -> (i32, i32) {
    %c0_i32 = arith.constant 0 : i32
    %c0_i32_0 = arith.constant 0 : i32
    %c0_i32_1 = arith.constant 0 : i32
    return %c0_i32, %c0_i32_0 : i32, i32
  }
  func.func @transform_2(%arg0: i32) -> (i32, i32) {
    %c0_i32 = arith.constant 0 : i32
    %c0_i32_0 = arith.constant 0 : i32
    %c0_i32_1 = arith.constant 0 : i32
    return %c0_i32, %c0_i32_0 : i32, i32
  }
  func.func @transform_3(%arg0: i32) -> (i32, i32) {
    %c0_i32 = arith.constant 0 : i32
    %c0_i32_0 = arith.constant 0 : i32
    %c0_i32_1 = arith.constant 0 : i32
    return %c0_i32, %c0_i32_0 : i32, i32
  }
  func.func @transform_4(%arg0: i32) -> (i32, i32) {
    %c0_i32 = arith.constant 0 : i32
    %c0_i32_0 = arith.constant 0 : i32
    %c0_i32_1 = arith.constant 0 : i32
    return %c0_i32, %c0_i32_0 : i32, i32
  }
  func.func @transform_5(%arg0: i32) -> (i32, i32) {
    %c0_i32 = arith.constant 0 : i32
    %c0_i32_0 = arith.constant 0 : i32
    %c0_i32_1 = arith.constant 0 : i32
    return %c0_i32, %c0_i32_0 : i32, i32
  }
  func.func @transform_6(%arg0: i32) -> (i32, i32) {
    %c0_i32 = arith.constant 0 : i32
    %c0_i32_0 = arith.constant 0 : i32
    %c0_i32_1 = arith.constant 0 : i32
    return %c0_i32, %c0_i32_0 : i32, i32
  }
  func.func @transform_7(%arg0: i32) -> (i32, i32) {
    %c0_i32 = arith.constant 0 : i32
    %c0_i32_0 = arith.constant 0 : i32
    return %c0_i32, %arg0 : i32, i32
  }
}

</mosaic_0001>

<bundles_post_ra>
// kernel: critic_forward.1
= control target key start
LH: loop header
LB: loop body
LE: loop exit
PB: predicated region body
PF: predicated region fallthrough
CT: control target
= control target key end

     0   :  { %s1425_s0 = inlined_call_operand.vmem [shape: f32[32,256], index: 0, kind: input, shape index: {}]   ;;  %s1426_s1 = inlined_call_operand.vmem [shape: f32[64,32], index: 1, kind: input, shape index: {}]   ;;  %s1427_s2 = inlined_call_operand.vmem [shape: f32[64,1], index: 2, kind: input, shape index: {}]   ;;  %s1428_s3 = inlined_call_operand.vmem [shape: f32[64,64], index: 3, kind: input, shape index: {}]   ;;  %s1429_s4 = inlined_call_operand.vmem [shape: f32[64,1], index: 4, kind: input, shape index: {}]   ;;  %s1430_s5 = inlined_call_operand.vmem [shape: f32[1,64], index: 5, kind: input, shape index: {}]   ;;  %s1431_s6 = inlined_call_operand.<no memory space> [shape: f32[1,1], index: 6, kind: input, shape index: {}]   ;;  %s1432_s7 = inlined_call_operand.hbm [shape: f32[1,256], index: 7, kind: output, shape index: {}]  }
   0x1   :  { %v12_v0 = vstv %s1431_s6 }
   0x2   :  { %13 = vst [vmem:[#allocation2] sm:$0x1] %v12_v0 }
   0x3   :  { %14 = vsyncpa [#allocation5], 0 }
   0x4   :  { %16 = vsyncpa [#allocation5 + $0x1], 0  ;;  %s1199_s26 = smov 0   ;;  %s1201_s27 = smov 0  }
   0x5   :  { %s1203_s28 = smov 0   ;;  %s1205_s29 = smov 0  }
   0x6 LB: > { %s874_s6 = sadd.s32 4294967295, %s1149_s29   ;;  %s875_s30 = sadd.s32 4294967294, %s1149_s29   ;;  %s1149_s29 = sphi %s1205_s29, %s1438_s29   ;;  %s1145_s28 = sphi %s1203_s28, %s1437_s28   ;;  %s1141_s27 = sphi %s1201_s27, %s1436_s27   ;;  %s1137_s26 = sphi %s1199_s26, %s1435_s26  }
   0x7   : > { %s1222_s8 = sadd.s32 1, %s1149_s29   ;;  %s29_s9 = sadd.s32 1, %s1145_s28 }
   0x8   : > { %s26_s10 = ssub.s32 %s1149_s29, %s1222_s8  ;;  %p36_p0 = scmp.ne.s32.totalorder %s1145_s28, %s1141_s27 }
   0x9   : > { %p27_p1 = scmp.eq.s32.totalorder %s26_s10, 0  ;;  %p37_p2 = scmp.eq.s32.totalorder %s1149_s29, 0 }
   0xa   : > { %p192_p3 = scmp.eq.s32.totalorder %s874_s6, 1  ;;  %p197_p4 = scmp.ne.s32.totalorder %s1141_s27, %s1137_s26 }
   0xb   : > { %s1235_s11 = scalar_select %p27_p1, %s1145_s28, %s29_s9  }
   0xc   : > { %p38_p5 = por %p37_p2, %p36_p0  ;;  %p1237_p6 = por %p192_p3, %p36_p0 }
   0xd   : > { %p198_p7 = scmp.eq.s32.totalorder %s875_s30, 1  ;;  %p877_p9 = scmp.ge.s32.totalorder %s1149_s29, 2 }
   0xf   : > { %p1241_p8 = por %p198_p7, %p197_p4  ;;  %232 = sbr.rel (%p877_p9) target bundleno = 29 (0x1d), region = 40 }
  0x16   : > { %235 = sbr.rel (!%p38_p5) target bundleno = 29 (0x1d), region = 44  ;;  %s237_s14 = sand.u32 (%p38_p5), 1, %s1145_s28  }
  0x17   : > { %s879_s15 = sshll.u32 (%p38_p5), %s1149_s29, 3  ;;  %s878_s16 = sshll.u32 (%p38_p5), %s237_s14, 5 }
  0x18   : > { %s241_s19 = scalar_lea.vmem (%p38_p5), %s1425_s0, %s879_s15  ;;  %s239_s20 = scalar_lea.vmem (%p38_p5), [#allocation3], %s878_s16 }
  0x19   : > { %v275_v1 = vld [vmem:[%s241_s19] sm:$0xff] (%p38_p5)  ;;  %v277_v2 = vld [vmem:[%s241_s19 + $0x10] sm:$0xff] (%p38_p5) }
  0x1a   : > { %v279_v3 = vld [vmem:[%s241_s19 + $0x20] sm:$0xff] (%p38_p5)  ;;  %276 = vst [vmem:[%s239_s20] sm:$0xff] (%p38_p5), %v275_v1  ;;  %278 = vst [vmem:[%s239_s20 + $0x8] sm:$0xff] (%p38_p5), %v277_v2  ;;  %v281_v4 = vld [vmem:[%s241_s19 + $0x30] sm:$0xff] (%p38_p5) }
  0x1b   : > { %280 = vst [vmem:[%s239_s20 + $0x10] sm:$0xff] (%p38_p5), %v279_v3  ;;  %282 = vst [vmem:[%s239_s20 + $0x18] sm:$0xff] (%p38_p5), %v281_v4 }
  0x1d PF: > { %p880_p10 = scmp.ge.s32.totalorder %s1149_s29, 1  ;;  %p287_p11 = scmp.lt.s32.totalorder %s1149_s29, 3 }
  0x1f   : > { %p288_p12 = pnand %p880_p10, %p287_p11 }
  0x20   : > { %s1256_s21 = sand.u32 (!%p288_p12), 1, %s1141_s27   ;;  %v324_v5 = vld [vmem:[%s1426_s1] sm:$0xff] (!%p288_p12)  ;;  %vm384_vm0 = vcmask (!%p288_p12), 261120   ;;  %v1151_v6 = vmov (!%p288_p12), 0   ;;  %v337_v13 = vld [vmem:[%s1427_s2 + $0x8] sm:$0xff] (!%p288_p12)  ;;  %v338_v14 = vld [vmem:[%s1427_s2 + $0x10] sm:$0xff] (!%p288_p12) }
  0x21   : > { %291 = sbr.rel (%p288_p12) target bundleno = 743 (0x2e7), region = 82  ;;  %s881_s24 = sshll.u32 (!%p288_p12), %s1256_s21, 5  ;;  %947 = vmatprep.mubr.msk.f32.mxu0 (!%p288_p12), %vm384_vm0, %v324_v5  ;;  %1085 = vset.pattern.permute.xlu0 (!%p288_p12), %v1151_v6  ;;  %v336_v7 = vld [vmem:[%s1427_s2] sm:$0xff] (!%p288_p12)  ;;  %v339_v16 = vld [vmem:[%s1427_s2 + $0x18] sm:$0xff] (!%p288_p12)  ;;  %v341_v18 = vld [vmem:[%s1427_s2 + $0x28] sm:$0xff] (!%p288_p12)  ;;  %vm578_vm1 = vcmask (!%p288_p12), 523264  }
  0x22   : > { %1086 = vset.pattern.permute.xlu1 (!%p288_p12), %v1151_v6  ;;  %s296_s9 = scalar_lea.vmem (!%p288_p12), [#allocation3], %s881_s24  ;;  %346 = vperm.xlu0 (!%p288_p12), %1085, %v336_v7   ;;  %v340_v17 = vld [vmem:[%s1427_s2 + $0x20] sm:$0xff] (!%p288_p12)  ;;  %v325_v19 = vld [vmem:[%s1426_s1 + $0x8] sm:$0xff] (!%p288_p12)  ;;  %v326_v20 = vld [vmem:[%s1426_s1 + $0x10] sm:$0xff] (!%p288_p12)  ;;  %vm1153_vm2 = vmmov (!%p288_p12), 0   ;;  %s899_s19 = sshll.u32 (!%p288_p12), %s874_s6, 4 }
  0x23   : > { %v332_v8 = vld [vmem:[%s296_s9] sm:$0xff] (!%p288_p12)  ;;  %v333_v9 = vld [vmem:[%s296_s9 + $0x8] sm:$0xff] (!%p288_p12)  ;;  %v334_v10 = vld [vmem:[%s296_s9 + $0x10] sm:$0xff] (!%p288_p12)  ;;  %356 = vperm.xlu1 (!%p288_p12), %1086, %v338_v14   ;;  %s323_s20 = scalar_lea.vmem (!%p288_p12), [#allocation4], %s1256_s21  ;;  %s1381_s25 = scalar_lea.hbm (!%p288_p12), %s1432_s7, %s899_s19 }
  0x24   : > { %v1006_v11 = vpack.c.bf16 (!%p288_p12), %v333_v9, %v332_v8  ;;  %v335_v12 = vld [vmem:[%s296_s9 + $0x18] sm:$0xff] (!%p288_p12)  ;;  %v342_v21 = vld [vmem:[%s1427_s2 + $0x30] sm:$0xff] (!%p288_p12)  ;;  %v531_v26 = vld [vmem:[%s1429_s4 + $0x8] sm:$0xff] (!%p288_p12)  ;;  %s814_s22 = sshll.u32 (!%p288_p12), %s323_s20, 4  ;;  %s802_s30 = scalar_lea.sflag (!%p288_p12), [#allocation5], %s1256_s21  ;;  %s1383_s22 = int_to_ptr.vmem [resolvable:$true] %s814_s22 }
  0x25   : > { %v1010_v15 = vpack.c.bf16 (!%p288_p12), %v335_v12, %v334_v10  ;;  %v343_v22 = vld [vmem:[%s1427_s2 + $0x38] sm:$0xff] (!%p288_p12)  ;;  %v328_v24 = vld [vmem:[%s1426_s1 + $0x20] sm:$0xff] (!%p288_p12)  ;;  %v329_v27 = vld [vmem:[%s1426_s1 + $0x28] sm:$0xff] (!%p288_p12)  ;;  %s1087_s9 = scalar_lea.vmem (!%p288_p12), %s1383_s22, 16  ;;  %s1155_s6 = smov (!%p288_p12), [#allocation4]  }
  0x26   : > { %1007 = vmatprep.subr.bf16.mxu0 (!%p288_p12), %v1006_v11  ;;  %351 = vperm.xlu0 (!%p288_p12), %1085, %v337_v13   ;;  %v327_v23 = vld [vmem:[%s1426_s1 + $0x18] sm:$0xff] (!%p288_p12)  ;;  %v530_v25 = vld [vmem:[%s1429_s4] sm:$0xff] (!%p288_p12)  ;;  %v330_v28 = vld [vmem:[%s1426_s1 + $0x30] sm:$0xff] (!%p288_p12)  ;;  %p1088_p13 = scmp.ne.s32.totalorder (!%p288_p12), %s1383_s22, %s1087_s9  ;;  %s1091_s10 = sshll.u32 (!%p288_p12), %s1155_s6, 4  ;;  %s1092_s10 = int_to_ptr.vmem [resolvable:$false] %s1091_s10 }
  0x27   : > { %1009 = vmatpush3.bf16.msra.mxu0 (!%p288_p12), %v1006_v11  ;;  %361 = vperm.xlu1 (!%p288_p12), %1086, %v339_v16   ;;  %v532_v29 = vld [vmem:[%s1429_s4 + $0x10] sm:$0xff] (!%p288_p12)  ;;  %v533_v30 = vld [vmem:[%s1429_s4 + $0x18] sm:$0xff] (!%p288_p12)  ;;  %v534_v32 = vld [vmem:[%s1429_s4 + $0x20] sm:$0xff] (!%p288_p12)  ;;  %s1093_s14 = scalar_lea.vmem (!%p288_p12), %s1092_s10, 32  ;;  %p1094_p2 = scmp.lt.s32.totalorder (!%p288_p12), %s1383_s22, %s1092_s10 }
  0x28   : > { %1011 = vmatprep.subr.bf16.mxu0 %v1010_v15  ;;  %v331_v31 = vld [vmem:[%s1426_s1 + $0x38] sm:$0xff]  ;;  %v535_v33 = vld [vmem:[%s1429_s4 + $0x28] sm:$0xff]  ;;  %v536_v34 = vld [vmem:[%s1429_s4 + $0x30] sm:$0xff]  ;;  %p1089_p0 = pnand %p1088_p13, %p1237_p6  ;;  %p1095_p3 = scmp.lt.s32.totalorder %s1093_s14, %s1087_s9 }
  0x29   : > { %v537_v35 = vld [vmem:[%s1429_s4 + $0x38] sm:$0xff]  ;;  %v717_v36 = vld [vmem:[#allocation2] sm:$0x1]  ;;  %v523_v10 = vld [vmem:[%s1428_s3 + $0x8] sm:$0xff] }
  0x2a   : > { %366 = vperm.xlu0 %1085, %v340_v17   ;;  %v522_v37 = vld [vmem:[%s1428_s3] sm:$0xff]  ;;  %v524_v11 = vld [vmem:[%s1428_s3 + $0x10] sm:$0xff]  ;;  %v525_v12 = vld [vmem:[%s1428_s3 + $0x18] sm:$0xff]  ;;  %v1152_v17 = vmov 0.0|0.0   ;;  %p1090_p1 = pneg %p1089_p0  ;;  %p1096_p4 = por %p1095_p3, %p1094_p2 }
  0x2b   : > { %1013 = vmatpush3.bf16.msra.mxu0 %v1010_v15  ;;  %371 = vperm.xlu1 %1086, %v341_v18   ;;  %v526_v13 = vld [vmem:[%s1428_s3 + $0x20] sm:$0xff]  ;;  %v527_v14 = vld [vmem:[%s1428_s3 + $0x28] sm:$0xff]  ;;  %v528_v15 = vld [vmem:[%s1428_s3 + $0x30] sm:$0xff]  ;;  %v1154_v18 = vmov 0.0  }
  0x2c   : > { %975 = vmatprep.mubr.msk.f32.mxu1 %vm578_vm1, %v522_v37  ;;  %v529_v16 = vld [vmem:[%s1428_s3 + $0x38] sm:$0xff]  ;;  %1030 = vmatprep.subr.bf16.mxu0 %v1152_v17  ;;  %p1097_p5 = pnand %p1096_p4, %p1090_p1 }
  0x2e   : > { %948 = vmatmul.mubr.msk.f32.vlgmr.msra.gmra.mrb[0].mxu0 %vm384_vm0, %v325_v19  ;;  %376 = vperm.xlu0 %1085, %v342_v21  }
  0x2f   : > { %950 = vmatprep.mubr.msk.f32.mxu0 %vm384_vm0, %v326_v20  ;;  %381 = vperm.xlu1 %1086, %v343_v22  }
  0x32   : > { %951 = vmatmul.mubr.msk.f32.gmra.mrb[2].mxu0 %vm384_vm0, %v327_v23  ;;  %540 = vperm.xlu0 %1085, %v530_v25  }
  0x33   : > { %953 = vmatprep.mubr.msk.f32.mxu0 %vm384_vm0, %v328_v24  ;;  %545 = vperm.xlu1 %1086, %v531_v26  }
  0x36   : > { %954 = vmatmul.mubr.msk.f32.gmra.mrb[4].mxu0 %vm384_vm0, %v329_v27  ;;  %550 = vperm.xlu0 %1085, %v532_v29  }
  0x37   : > { %956 = vmatprep.mubr.msk.f32.mxu0 %vm384_vm0, %v330_v28  ;;  %555 = vperm.xlu1 %1086, %v533_v30  }
  0x3a   : > { %957 = vmatmul.mubr.msk.f32.gmra.mrb[6].mxu0 %vm384_vm0, %v331_v31  ;;  %560 = vperm.xlu0 %1085, %v534_v32  }
  0x3b   : > { %565 = vperm.xlu1 %1086, %v535_v33   ;;  %1003 = vmatprep.mubr.msk.f32.mxu0 %vm1153_vm2, %v1154_v18 }
  0x3e   : > { %570 = vperm.xlu0 %1085, %v536_v34  }
  0x3f   : > { %575 = vperm.xlu1 %1086, %v537_v35  }
  0x42   : > { %720 = vperm.xlu0 %1085, %v717_v36  }
  0xa1   : > { %v347_v38 = vpop.permute.xlu0 %346 }
  0xa2   : > { %v357_v39 = vpop.permute.xlu1 %356 }
  0xa5   : > { %v352_v40 = vpop.permute.xlu0 %351 }
  0xa6   : > { %v362_v41 = vpop.permute.xlu1 %361 }
  0xa9   : > { %v367_v54 = vpop.permute.xlu0 %366 }
  0xaa   : > { %v372_v51 = vpop.permute.xlu1 %371 }
  0xad   : > { %v377_v2 = vpop.permute.xlu0 %376 }
  0xae   : > { %v382_v63 = vpop.permute.xlu1 %381 }
  0xb1   : > { %v541_v20 = vpop.permute.xlu0 %540 }
  0xb2   : > { %v546_v19 = vpop.permute.xlu1 %545 }
  0xb5   : > { %v551_v23 = vpop.permute.xlu0 %550 }
  0xb6   : > { %v556_v21 = vpop.permute.xlu1 %555 }
  0xb9   : > { %v561_v35 = vpop.permute.xlu0 %560 }
  0xba   : > { %v566_v32 = vpop.permute.xlu1 %565 }
 0x101   : > { %v949_v42 = vpop.f32.mrb[0].mxu0 }
 0x102   : > { %v481_v43 = vadd.f32 %v949_v42, %v352_v40  ;;  %v475_v44 = vpop.f32.mrb[1].mxu0 }
 0x103   : > { %v476_v45 = vadd.f32 %v475_v44, %v347_v38  ;;  %v576_v44 = vpop.permute.xlu1 %575 }
 0x104   : > { %v515_v46 = vmax.f32 %v481_v43, 0.0 }
 0x105   : > { %v514_v47 = vmax.f32 %v476_v45, 0.0  ;;  %v952_v48 = vpop.f32.mrb[2].mxu0 }
 0x106   : > { %v491_v49 = vadd.f32 %v952_v48, %v362_v41  ;;  %v485_v50 = vpop.f32.mrb[3].mxu0 }
 0x107   : > { %v486_v52 = vadd.f32 %v485_v50, %v357_v39  ;;  %v1014_v53 = vpack.c.bf16 %v515_v46, %v514_v47  ;;  %v571_v47 = vpop.permute.xlu0 %570 }
 0x108   : > { %v517_v55 = vmax.f32 %v491_v49, 0.0 }
 0x109   : > { %v516_v56 = vmax.f32 %v486_v52, 0.0  ;;  %v955_v57 = vpop.f32.mrb[4].mxu0  ;;  %1015 = vmatprep.subr.bf16.mxu1 %v1014_v53 }
 0x10a   : > { %v501_v58 = vadd.f32 %v955_v57, %v372_v51  ;;  %v495_v59 = vpop.f32.mrb[5].mxu0  ;;  %1017 = vmatpush3.bf16.msra.mxu1 %v1014_v53 }
 0x10b   : > { %v1018_v60 = vpack.c.bf16 %v517_v55, %v516_v56  ;;  %v496_v61 = vadd.f32 %v495_v59, %v367_v54  ;;  %v716_v55 = vld [vmem:[%s1430_s5] sm:$0x1]  ;;  %v723_v56 = vlaneseq  ;;  %v721_v59 = vpop.permute.xlu0 %720 }
 0x10c   : > { %v519_v62 = vmax.f32 %v501_v58, 0.0 }
 0x10d   : > { %v518_v0 = vmax.f32 %v496_v61, 0.0  ;;  %v958_v1 = vpop.f32.mrb[6].mxu0  ;;  %1019 = vmatprep.subr.bf16.mxu1 %v1018_v60  ;;  %v724_v57 = vshrl.u32 %v723_v56, 7 }
 0x10e   : > { %v511_v3 = vadd.f32 %v958_v1, %v382_v63  ;;  %v505_v4 = vpop.f32.mrb[7].mxu0  ;;  %1021 = vmatpush3.bf16.msra.mxu1 %v1018_v60 }
 0x10f   : > { %v1022_v5 = vpack.c.bf16 %v519_v62, %v518_v0  ;;  %v506_v6 = vadd.f32 %v505_v4, %v377_v2  ;;  %v725_v58 = vsub.s32 0, %v724_v57 }
 0x110   : > { %v521_v7 = vmax.f32 %v511_v3, 0.0 }
 0x111   : > { %v520_v8 = vmax.f32 %v506_v6, 0.0  ;;  %1023 = vmatprep.subr.bf16.mxu1 %v1022_v5  ;;  %v726_v60 = vrot.slane %v721_v59, %v725_v58 }
 0x112   : > { %1025 = vmatpush3.bf16.msra.mxu1 %v1022_v5 }
 0x113   : > { %v1026_v9 = vpack.c.bf16 %v521_v7, %v520_v8 }
 0x115   : > { %1027 = vmatprep.subr.bf16.mxu1 %v1026_v9 }
 0x116   : > { %1029 = vmatpush3.bf16.msra.mxu1 %v1026_v9 }
 0x119   : > { %976 = vmatmul.mubr.msk.f32.vlgmr.msra.gmra.mrb[0].mxu1 %vm578_vm1, %v523_v10 }
 0x11a   : > { %978 = vmatprep.mubr.msk.f32.mxu1 %vm578_vm1, %v524_v11 }
 0x11d   : > { %979 = vmatmul.mubr.msk.f32.gmra.mrb[2].mxu1 %vm578_vm1, %v525_v12 }
 0x11e   : > { %981 = vmatprep.mubr.msk.f32.mxu1 %vm578_vm1, %v526_v13 }
 0x121   : > { %982 = vmatmul.mubr.msk.f32.gmra.mrb[4].mxu1 %vm578_vm1, %v527_v14 }
 0x122   : > { %984 = vmatprep.mubr.msk.f32.mxu1 %vm578_vm1, %v528_v15 }
 0x125   : > { %985 = vmatmul.mubr.msk.f32.gmra.mrb[6].mxu1 %vm578_vm1, %v529_v16 }
 0x1ec   : > { %v977_v22 = vpop.f32.mrb[0].mxu1 }
 0x1ed   : > { %v675_v24 = vadd.f32 %v977_v22, %v546_v19  ;;  %v669_v25 = vpop.f32.mrb[1].mxu1 }
 0x1ee   : > { %v670_v26 = vadd.f32 %v669_v25, %v541_v20 }
 0x1ef   : > { %v709_v27 = vmax.f32 %v675_v24, 0.0 }
 0x1f0   : > { %v708_v28 = vmax.f32 %v670_v26, 0.0  ;;  %v980_v29 = vpop.f32.mrb[2].mxu1 }
 0x1f1   : > { %v685_v30 = vadd.f32 %v980_v29, %v556_v21  ;;  %v679_v31 = vpop.f32.mrb[3].mxu1 }
 0x1f2   : > { %v1031_v33 = vpack.c.bf16 %v709_v27, %v708_v28  ;;  %v680_v34 = vadd.f32 %v679_v31, %v551_v23 }
 0x1f3   : > { %v711_v36 = vmax.f32 %v685_v30, 0.0 }
 0x1f4   : > { %v710_v37 = vmax.f32 %v680_v34, 0.0  ;;  %v983_v38 = vpop.f32.mrb[4].mxu1  ;;  %1032 = vmatpush3.bf16.msra.mxu0 %v1031_v33 }
 0x1f5   : > { %v695_v39 = vadd.f32 %v983_v38, %v566_v32  ;;  %v689_v40 = vpop.f32.mrb[5].mxu1  ;;  %1033 = vmatprep.subr.bf16.mxu0 %v1152_v17 }
 0x1f6   : > { %v1034_v41 = vpack.c.bf16 %v711_v36, %v710_v37  ;;  %v690_v42 = vadd.f32 %v689_v40, %v561_v35 }
 0x1f7   : > { %v713_v43 = vmax.f32 %v695_v39, 0.0 }
 0x1f8   : > { %v712_v45 = vmax.f32 %v690_v42, 0.0  ;;  %v986_v46 = vpop.f32.mrb[6].mxu1  ;;  %1035 = vmatpush3.bf16.msra.mxu0 %v1034_v41 }
 0x1f9   : > { %v705_v48 = vadd.f32 %v986_v46, %v576_v44  ;;  %v699_v49 = vpop.f32.mrb[7].mxu1  ;;  %1036 = vmatprep.subr.bf16.mxu0 %v1152_v17 }
 0x1fa   : > { %v1037_v50 = vpack.c.bf16 %v713_v43, %v712_v45  ;;  %v700_v51 = vadd.f32 %v699_v49, %v571_v47 }
 0x1fb   : > { %v715_v52 = vmax.f32 %v705_v48, 0.0 }
 0x1fc   : > { %v714_v53 = vmax.f32 %v700_v51, 0.0  ;;  %1038 = vmatpush3.bf16.msra.mxu0 %v1037_v50 }
 0x1fd   : > { %1039 = vmatprep.subr.bf16.mxu0 %v1152_v17 }
 0x1fe   : > { %v1040_v54 = vpack.c.bf16 %v715_v52, %v714_v53 }
 0x200   : > { %1041 = vmatpush3.bf16.msra.mxu0 %v1040_v54 }
 0x203   : > { %1004 = vmatmul.mubr.msk.f32.vlgmr.msra.gmra.mrb[8].mxu0 %vm578_vm1, %v716_v55 }
 0x2d6   : > { %v796_v61 = vpop.f32.mrb[8].mxu0 }
 0x2d7   : > { %v797_v62 = vadd.f32 %v796_v61, %v726_v60  ;;  %v1005_v63 = vpop.f32.mrb[9].mxu0 }
 0x2d9   : > { %800 = vst [vmem:[%s323_s20] sm:$0x1] %v797_v62 }
 0x2da   : > { %1100 = shalt.err (!%p1097_p5)
}
 0x2db   : > { %s1101_s21 = scalar_lea.hbm %s1381_s25, 16  ;;  %s1105_s17 = scalar_lea.hbm %s1432_s7, 32 }
 0x2dc   : > { %p1102_p7 = scmp.ne.s32.totalorder %s1381_s25, %s1101_s21  ;;  %p1106_p12 = scmp.lt.u32.totalorder %s1381_s25, %s1432_s7 }
 0x2dd   : > { %p1107_p13 = scmp.lt.u32.totalorder %s1105_s17, %s1101_s21  ;;  %p1109_p1 = scmp.lt.u32.totalorder %s1101_s21, %s1381_s25 }
 0x2de   : > { %p1103_p10 = pnand %p1102_p7, %p1237_p6 }
 0x2df   : > { %p1108_p0 = por %p1107_p13, %p1106_p12 }
 0x2e0   : > { %p1104_p11 = pneg %p1103_p10 }
 0x2e1   : > { %p1110_p2 = por %p1109_p1, %p1108_p0 }
 0x2e3   : > { %p1111_p3 = pnand %p1110_p2, %p1104_p11 }
 0x2e5   : > { %1114 = shalt.err (!%p1111_p3)
}
 0x2e6   : > { %1042 = dma.vmem_to_hbm [thread:$0]  (%p1237_p6), %s1383_s22, 16, %s1381_s25, %s802_s30  }
 0x2e7 PF: > { %s826_s20 = sand.u32 1, %s1137_s26   ;;  %p1045_p4 = pnand %p877_p9, %p1241_p8 }
 0x2e8   : > { %s827_s23 = scalar_lea.sflag [#allocation5], %s826_s20 }
 0x2e9   : > { %1132 = dma.done.wait (!%p1045_p4), %s827_s23, 16  }
 0x2ea   : > { %1134 = vsyncadd (!%p1045_p4), %s827_s23, 4294967280  ;;  %p19_p5 = scmp.ge.s32.totalorder %s1222_s8, 4   ;;  %s1435_s26 = smov %s1141_s27 }
 0x2eb   : > { %s1436_s27 = smov %s1145_s28  ;;  %s1437_s28 = smov %s1235_s11 }
 0x2ec   : > { %s1438_s29 = smov %s1222_s8  ;;  %21 = sbr.rel (!%p19_p5) target bundleno = 6 (0x6), region = 126 }
 0x2f3   :  { %831 = vsyncpa [#allocation5], 1 }
 0x2f4   :  { %833 = vsyncpa [#allocation5 + $0x1], 1 }

</bundles_post_ra>
